<compile_context>
chip_gen: v7x
topology: tpu7x:2x2x1
jax: 0.10.0
libtpu: 0.0.40
codegen_flags: <defaults>
</compile_context>

<pallas_src>
import jax
import jax.numpy as jnp
from jax.experimental import pallas as pl
from jax.experimental.pallas import tpu as pltpu

SAMPLE_NUM = 50   # in_features of map1
HIDDEN = 128      # hidden width of map1 / in_features of map2

# Batch-tile cap.  Per-row VMEM (f32): x tile lane-padded 50->128 lanes
# (512 B/row, double-buffered), h intermediate (~512 B/row), lane-padded
# (TB, 1) output tile (512 B/row, double-buffered) -> ~2.5-3 KiB/row, so
# TB=4096 is ~11-13 MiB: inside the 32 MiB scoped limit set below on every
# generation (v5e/v6e physical 128 MiB, v7x 64 MiB).
_TILE_CAP = 4096
_VMEM_LIMIT_BYTES = 32 * 1024 * 1024


def _round_up(n, m):
    return ((n + m - 1) // m) * m


def discriminator_kernel(x_ref, w1_ref, b1_ref, w2_ref, b2_ref, o_ref):
    # Layer 1 on the MXU: (TB, 50) @ (50, 128) -> (TB, 128), f32 accumulate.
    h = jnp.dot(x_ref[...], w1_ref[...], preferred_element_type=jnp.float32)
    h = jnp.maximum(h + b1_ref[...], 0.0)                   # bias + ReLU (VPU)
    # Layer 2 (128 -> 1) as an N=1 MXU matmul.  The binding slots in this
    # kernel are DMA/VALU/XLU, not the MXU, so spending idle MXU cycles here
    # is cheaper than a 7-stage cross-lane reduce + relayout on the XLU/VALU.
    y = jnp.dot(h, w2_ref[...], preferred_element_type=jnp.float32)  # (TB, 1)
    y = y + b2_ref[0, 0]                                    # scalar bias (SMEM)
    # Exact sigmoid: single EUP op, no exp(-y) overflow path; EUP is idle.
    o_ref[...] = jax.nn.sigmoid(y).astype(o_ref.dtype)


def discriminator_forward(x, w1, b1, w2, b2, *, tile_b=None):
    """sigmoid(relu(x @ w1 + b1) @ w2^T + b2), returned with shape (B, 1).

    x  : (B, SAMPLE_NUM), any float dtype (bf16 stays bf16 -- no wrapper cast).
    w1 : (SAMPLE_NUM, HIDDEN)   map1.weight pre-transposed.
    b1 : (HIDDEN,) or (1, HIDDEN).
    w2 : (1, HIDDEN) or (HIDDEN,)  map2.weight (PyTorch-native row).
    b2 : scalar / (1,) / (1, 1).
    """
    B = x.shape[0]
    b1 = b1.reshape(1, HIDDEN)
    w2 = w2.reshape(HIDDEN, 1)                      # column vector: N=1 MXU RHS
    b2 = b2.reshape(1, 1).astype(jnp.float32)       # single scalar -> SMEM

    if tile_b is None:
        if B <= 256:
            # Single full-extent block (always layout-legal, even for odd B).
            tile_b = B
        else:
            # >=2 tiles so both v7x TensorCores get work; 128-aligned; capped
            # for VMEM.  Ragged last block is handled by Pallas (masked store).
            tile_b = min(_TILE_CAP, _round_up(pl.cdiv(B, 2), 128))
    num_tiles = pl.cdiv(B, tile_b)

    return pl.pallas_call(
        discriminator_kernel,
        out_shape=jax.ShapeDtypeStruct((B, 1), x.dtype),
        grid_spec=pltpu.PrefetchScalarGridSpec(
            num_scalar_prefetch=0,
            grid=(num_tiles,),
            in_specs=[
                # x tiled along batch; weights/biases resident across steps.
                pl.BlockSpec((tile_b, SAMPLE_NUM), lambda i: (i, 0)),
                pl.BlockSpec((SAMPLE_NUM, HIDDEN), lambda i: (0, 0)),
                pl.BlockSpec((1, HIDDEN), lambda i: (0, 0)),
                pl.BlockSpec((HIDDEN, 1), lambda i: (0, 0)),
                pl.BlockSpec(memory_space=pltpu.MemorySpace.SMEM),  # b2 scalar
            ],
            out_specs=pl.BlockSpec((tile_b, 1), lambda i: (i, 0)),
        ),
        compiler_params=pltpu.CompilerParams(
            dimension_semantics=("parallel",),   # shard batch tiles across TCs
            vmem_limit_bytes=_VMEM_LIMIT_BYTES,
        ),
    )(x, w1, b1, w2, b2)


def init_params(key, dtype=jnp.float32):
    # Synthetic init mimicking nn.Linear's U(-1/sqrt(fan_in), 1/sqrt(fan_in)).
    k1, k2, k3, k4 = jax.random.split(key, 4)
    bound1 = 1.0 / float(SAMPLE_NUM) ** 0.5
    bound2 = 1.0 / float(HIDDEN) ** 0.5
    w1 = jax.random.uniform(k1, (SAMPLE_NUM, HIDDEN), dtype, -bound1, bound1)
    b1 = jax.random.uniform(k2, (HIDDEN,), dtype, -bound1, bound1)
    w2 = jax.random.uniform(k3, (1, HIDDEN), dtype, -bound2, bound2)
    b2 = jax.random.uniform(k4, (1,), dtype, -bound2, bound2)
    return w1, b1, w2, b2


def reference_forward(x, w1, b1, w2, b2):
    h = jnp.maximum(x @ w1 + b1.reshape(1, HIDDEN), 0.0)
    return jax.nn.sigmoid(h @ w2.reshape(HIDDEN, 1) + b2.reshape(1, 1))


if __name__ == "__main__":
    key = jax.random.PRNGKey(0)
    kx_small, kx_big, kp = jax.random.split(key, 3)
    w1, b1, w2, b2 = init_params(kp)

    # Small single-block batch (exercises the full-extent-block path).
    x_small = jax.random.normal(kx_small, (10, SAMPLE_NUM), jnp.float32)
    out_small = jax.block_until_ready(
        discriminator_forward(x_small, w1, b1, w2, b2))
    ref_small = reference_forward(x_small, w1, b1, w2, b2)
    assert out_small.shape == (10, 1)
    assert jnp.allclose(out_small, ref_small, atol=2e-3, rtol=2e-3)

    # Multi-tile batch with a ragged last block (exercises masked edge stores,
    # no wrapper-side padding).
    x_big = jax.random.normal(kx_big, (300, SAMPLE_NUM), jnp.float32)
    out_big = jax.block_until_ready(
        discriminator_forward(x_big, w1, b1, w2, b2))
    ref_big = reference_forward(x_big, w1, b1, w2, b2)
    assert out_big.shape == (300, 1)
    assert jnp.allclose(out_big, ref_big, atol=2e-3, rtol=2e-3)

    print("KERNEL_OK")
</pallas_src>

<mosaic_0001>
module attributes {stable_mosaic.version = 11 : i64} {
  func.func @discriminator_kernel(%arg0: i32, %arg1: memref<10x50xf32, #tpu.memory_space<vmem>>, %arg2: memref<50x128xf32, #tpu.memory_space<vmem>>, %arg3: memref<1x128xf32, #tpu.memory_space<vmem>>, %arg4: memref<128x1xf32, #tpu.memory_space<vmem>>, %arg5: memref<1x1xf32, #tpu.memory_space<smem>>, %arg6: memref<10x1xf32, #tpu.memory_space<vmem>>) attributes {dimension_semantics = [#tpu.dimension_semantics<parallel>], iteration_bounds = array<i64: 1>, scalar_prefetch = 0 : i64, scratch_operands = 0 : i64, tpu.core_type = #tpu.core_type<tc>, window_params = [{transform_indices = @transform_0, window_bounds = array<i64: 10, 50>}, {pipeline_mode = #tpu.pipeline_mode<synchronous>, transform_indices = @transform_1, window_bounds = array<i64: 50, 128>}, {pipeline_mode = #tpu.pipeline_mode<synchronous>, transform_indices = @transform_2, window_bounds = array<i64: 1, 128>}, {pipeline_mode = #tpu.pipeline_mode<synchronous>, transform_indices = @transform_3, window_bounds = array<i64: 128, 1>}, {transform_indices = @transform_4, window_bounds = array<i64: 1, 1>}, {transform_indices = @transform_5, window_bounds = array<i64: 10, 1>}]} {
    %c0 = arith.constant 0 : index
    %c0_0 = arith.constant 0 : index
    %0 = vector.load %arg1[%c0, %c0_0] : memref<10x50xf32, #tpu.memory_space<vmem>>, vector<10x50xf32>
    %c0_1 = arith.constant 0 : index
    %c0_2 = arith.constant 0 : index
    %1 = vector.load %arg2[%c0_1, %c0_2] : memref<50x128xf32, #tpu.memory_space<vmem>>, vector<50x128xf32>
    %cst = arith.constant dense<0.000000e+00> : vector<10x128xf32>
    %2 = tpu.matmul %0, %1, %cst {dimension_numbers = #tpu.dot_dimension_numbers<[1], [0], [0], [1], [0, 0, 1, 1], [], []>} : vector<10x50xf32>, vector<50x128xf32>, vector<10x128xf32> -> vector<10x128xf32>
    %c0_3 = arith.constant 0 : index
    %c0_4 = arith.constant 0 : index
    %3 = vector.load %arg3[%c0_3, %c0_4] : memref<1x128xf32, #tpu.memory_space<vmem>>, vector<1x128xf32>
    %4 = vector.broadcast %3 : vector<1x128xf32> to vector<10x128xf32>
    %5 = arith.addf %2, %4 : vector<10x128xf32>
    %cst_5 = arith.constant 0.000000e+00 : f32
    %6 = vector.broadcast %cst_5 : f32 to vector<10x128xf32>
    %7 = arith.maximumf %5, %6 : vector<10x128xf32>
    %c0_6 = arith.constant 0 : index
    %c0_7 = arith.constant 0 : index
    %8 = vector.load %arg4[%c0_6, %c0_7] : memref<128x1xf32, #tpu.memory_space<vmem>>, vector<128x1xf32>
    %cst_8 = arith.constant dense<0.000000e+00> : vector<10x1xf32>
    %9 = tpu.matmul %7, %8, %cst_8 {dimension_numbers = #tpu.dot_dimension_numbers<[1], [0], [0], [1], [0, 0, 1, 1], [], []>} : vector<10x128xf32>, vector<128x1xf32>, vector<10x1xf32> -> vector<10x1xf32>
    %c0_9 = arith.constant 0 : index
    %c0_10 = arith.constant 0 : index
    %10 = memref.load %arg5[%c0_9, %c0_10] : memref<1x1xf32, #tpu.memory_space<smem>>
    %11 = vector.broadcast %10 : f32 to vector<10x1xf32>
    %12 = arith.addf %9, %11 : vector<10x1xf32>
    %13 = arith.negf %12 : vector<10x1xf32>
    %14 = math.exp %13 : vector<10x1xf32>
    %cst_11 = arith.constant 1.000000e+00 : f32
    %15 = vector.broadcast %cst_11 : f32 to vector<10x1xf32>
    %16 = arith.addf %15, %14 : vector<10x1xf32>
    %17 = arith.divf %15, %16 : vector<10x1xf32>
    %c0_12 = arith.constant 0 : index
    %c0_13 = arith.constant 0 : index
    %18 = vector.load %arg6[%c0_12, %c0_13] : memref<10x1xf32, #tpu.memory_space<vmem>>, vector<10x1xf32>
    tpu.vector_store %arg6[%c0_12, %c0_13], %17 {strides = array<i32>} : memref<10x1xf32, #tpu.memory_space<vmem>>, vector<10x1xf32>,
    return
  }
  func.func @transform_0(%arg0: i32) -> (i32, i32) {
    %c0_i32 = arith.constant 0 : i32
    %c0_i32_0 = arith.constant 0 : i32
    return %arg0, %c0_i32 : i32, i32
  }
  func.func @transform_1(%arg0: i32) -> (i32, i32) {
    %c0_i32 = arith.constant 0 : i32
    %c0_i32_0 = arith.constant 0 : i32
    %c0_i32_1 = arith.constant 0 : i32
    return %c0_i32, %c0_i32_0 : i32, i32
  }
  func.func @transform_2(%arg0: i32) -> (i32, i32) {
    %c0_i32 = arith.constant 0 : i32
    %c0_i32_0 = arith.constant 0 : i32
    %c0_i32_1 = arith.constant 0 : i32
    return %c0_i32, %c0_i32_0 : i32, i32
  }
  func.func @transform_3(%arg0: i32) -> (i32, i32) {
    %c0_i32 = arith.constant 0 : i32
    %c0_i32_0 = arith.constant 0 : i32
    %c0_i32_1 = arith.constant 0 : i32
    return %c0_i32, %c0_i32_0 : i32, i32
  }
  func.func @transform_4(%arg0: i32) -> (i32, i32) {
    %c0_i32 = arith.constant 0 : i32
    %c0_i32_0 = arith.constant 0 : i32
    %c0_i32_1 = arith.constant 0 : i32
    return %c0_i32, %c0_i32_0 : i32, i32
  }
  func.func @transform_5(%arg0: i32) -> (i32, i32) {
    %c0_i32 = arith.constant 0 : i32
    %c0_i32_0 = arith.constant 0 : i32
    return %arg0, %c0_i32 : i32, i32
  }
}

</mosaic_0001>

<bundles_post_ra>
// kernel: tpu_custom_call.1
= control target key start
LH: loop header
LB: loop body
LE: loop exit
PB: predicated region body
PF: predicated region fallthrough
CT: control target
= control target key end

     0   :  { %vm37_vm0 = vcmask 408576   ;;  %vm44_vm1 = vcmask 1041408   ;;  %vm232_vm2 = vcmask 1024   ;;  %vm230_vm3 = vcmask 7168   ;;  %s494_s1 = inlined_call_operand.vmem [shape: f32[50,128], index: 1, kind: input, shape index: {}]   ;;  %s495_s0 = inlined_call_operand.vmem [shape: f32[10,50], index: 0, kind: input, shape index: {}]   ;;  %s496_s3 = inlined_call_operand.vmem [shape: f32[128,1], index: 3, kind: input, shape index: {}]   ;;  %s497_s2 = inlined_call_operand.vmem [shape: f32[1,128], index: 2, kind: input, shape index: {}]   ;;  %s498_s4 = inlined_call_operand.<no memory space> [shape: f32[1,1], index: 4, kind: input, shape index: {}]   ;;  %s499_s5 = inlined_call_operand.vmem [shape: f32[10,1], index: 5, kind: output, shape index: {}]  }
   0x1   :  { %v23_v0 = vld [vmem:[%s494_s1] sm:$0xff]  ;;  %v24_v1 = vld [vmem:[%s494_s1 + $0x8] sm:$0xff]  ;;  %v25_v2 = vld [vmem:[%s494_s1 + $0x10] sm:$0xff]  ;;  %v142_v43 = vstv %s498_s4 }
   0x2   :  { %v323_v3 = vpack.c.bf16 %v24_v1, %v23_v0  ;;  %v26_v4 = vld [vmem:[%s494_s1 + $0x18] sm:$0xff]  ;;  %v27_v6 = vld [vmem:[%s494_s1 + $0x20] sm:$0xff]  ;;  %v28_v7 = vld [vmem:[%s494_s1 + $0x28] sm:$0xff] }
   0x3   :  { %v327_v5 = vpack.c.bf16 %v26_v4, %v25_v2  ;;  %v21_v8 = vld [vmem:[%s495_s0] sm:$0xff]  ;;  %v126_v10 = vld [vmem:[%s496_s3 + $0x8] sm:$0xff]  ;;  %v127_v11 = vld [vmem:[%s496_s3 + $0x10] sm:$0xff]  ;;  %v331_v14 = vpack.c.bf16 %v28_v7, %v27_v6 }
   0x4   :  { %324 = vmatprep.subr.bf16.mxu0 %v323_v3  ;;  %285 = vmatprep.mubr.msk.f32.mxu0 %vm37_vm0, %v21_v8  ;;  %v125_v9 = vld [vmem:[%s496_s3] sm:$0xff]  ;;  %v128_v13 = vld [vmem:[%s496_s3 + $0x18] sm:$0xff]  ;;  %v130_v17 = vld [vmem:[%s496_s3 + $0x28] sm:$0xff] }
   0x5   :  { %326 = vmatpush3.bf16.msra.mxu0 %v323_v3  ;;  %v335_v12 = vpack.c.bf16 %v126_v10, %v125_v9  ;;  %v339_v15 = vpack.c.bf16 %v128_v13, %v127_v11  ;;  %v129_v16 = vld [vmem:[%s496_s3 + $0x20] sm:$0xff]  ;;  %v131_v19 = vld [vmem:[%s496_s3 + $0x30] sm:$0xff]  ;;  %v132_v20 = vld [vmem:[%s496_s3 + $0x38] sm:$0xff] }
   0x6   :  { %328 = vmatprep.subr.bf16.mxu0 %v327_v5  ;;  %v343_v18 = vpack.c.bf16 %v130_v17, %v129_v16  ;;  %v29_v21 = vld [vmem:[%s494_s1 + $0x30] sm:$0x3]  ;;  %v347_v22 = vpack.c.bf16 %v132_v20, %v131_v19  ;;  %v133_v23 = vld [vmem:[%s496_s3 + $0x40] sm:$0xff]  ;;  %v134_v24 = vld [vmem:[%s496_s3 + $0x48] sm:$0xff] }
   0x7   :  { %336 = vmatprep.subr.bf16.mxu1 %v335_v12  ;;  %v22_v25 = vld [vmem:[%s495_s0 + $0x8] sm:$0x3]  ;;  %v351_v26 = vpack.c.bf16 %v134_v24, %v133_v23  ;;  %v135_v27 = vld [vmem:[%s496_s3 + $0x50] sm:$0xff]  ;;  %v136_v28 = vld [vmem:[%s496_s3 + $0x58] sm:$0xff] }
   0x8   :  { %338 = vmatpush3.bf16.msra.mxu1 %v335_v12  ;;  %v355_v29 = vpack.c.bf16 %v136_v28, %v135_v27  ;;  %v137_v30 = vld [vmem:[%s496_s3 + $0x60] sm:$0xff]  ;;  %v138_v31 = vld [vmem:[%s496_s3 + $0x68] sm:$0xff]  ;;  %v139_v33 = vld [vmem:[%s496_s3 + $0x70] sm:$0xff] }
   0x9   :  { %330 = vmatpush3.bf16.msra.mxu0 %v327_v5  ;;  %340 = vmatprep.subr.bf16.mxu1 %v339_v15  ;;  %v359_v32 = vpack.c.bf16 %v138_v31, %v137_v30  ;;  %v140_v34 = vld [vmem:[%s496_s3 + $0x78] sm:$0xff]  ;;  %v238_v36 = vld [vmem:[%s497_s2] ss:$0 sm:$0xff] }
   0xa   :  { %332 = vmatprep.subr.bf16.mxu0 %v331_v14  ;;  %v363_v35 = vpack.c.bf16 %v140_v34, %v139_v33 }
   0xc   :  { %342 = vmatpush3.bf16.msra.mxu1 %v339_v15 }
   0xd   :  { %334 = vmatpush3.bf16.msra.mxu0 %v331_v14  ;;  %344 = vmatprep.subr.bf16.mxu1 %v343_v18 }
   0xe   :  { %283 = vmatprep.subr.msk.mxu0 %vm44_vm1, %v29_v21 }
  0x10   :  { %346 = vmatpush3.bf16.msra.mxu1 %v343_v18 }
  0x11   :  { %284 = vmatpush3.msk.msra.mxu0 %vm44_vm1, %v29_v21  ;;  %348 = vmatprep.subr.bf16.mxu1 %v347_v22 }
  0x12   :  { %286 = vmatmul.mubr.msk.f32.vlgmr.msra.gmra.mrb[0].mxu0 %vm37_vm0, %v22_v25 }
  0x14   :  { %350 = vmatpush3.bf16.msra.mxu1 %v347_v22 }
  0x15   :  { %352 = vmatprep.subr.bf16.mxu1 %v351_v26 }
  0x18   :  { %354 = vmatpush3.bf16.msra.mxu1 %v351_v26 }
  0x19   :  { %356 = vmatprep.subr.bf16.mxu1 %v355_v29 }
  0x1c   :  { %358 = vmatpush3.bf16.msra.mxu1 %v355_v29 }
  0x1d   :  { %360 = vmatprep.subr.bf16.mxu1 %v359_v32 }
  0x20   :  { %362 = vmatpush3.bf16.msra.mxu1 %v359_v32 }
  0x21   :  { %364 = vmatprep.subr.bf16.mxu1 %v363_v35 }
  0x24   :  { %366 = vmatpush3.bf16.msra.mxu1 %v363_v35 }
  0xe5   :  { %v287_v37 = vpop.f32.mrb[0].mxu0 }
  0xe6   :  { %v120_v38 = vadd.f32 %v287_v37, %v238_v36  ;;  %v114_v39 = vpop.f32.mrb[1].mxu0 }
  0xe7   :  { %v115_v40 = vadd.f32 %v238_v36, %v114_v39 }
  0xe8   :  { %v124_v42 = vmax.f32 %v120_v38, 0.0 }
  0xe9   :  { %v123_v41 = vmax.f32 %v115_v40, 0.0 }
  0xeb   :  { %320 = vmatprep.mubr.f32.mxu1 %v123_v41 }
  0xec   :  { %321 = vmatmul.mubr.f32.vlgmr.msra.gmra.mrb[0].mxu1 %v124_v42 }
 0x1bf   :  { %v322_v44 = vpop.f32.mrb[0].mxu1 }
 0x1c0   :  { %v215_v45 = vadd.f32 %v322_v44, %v142_v43  ;;  %v209_v46 = vpop.f32.mrb[1].mxu1 }
 0x1c1   :  { %v210_v47 = vadd.f32 %v209_v46, %v142_v43 }
 0x1c2   :  { %v243_v48 = vmul.f32 -1.442695, %v215_v45 }
 0x1c3   :  { %v242_v49 = vmul.f32 -1.442695, %v210_v47 }
 0x1c4   :  { %367 = vpow2.f32 %v243_v48 }
 0x1c5   :  { %369 = vpow2.f32 %v242_v49 }
 0x1ce   :  { %v368_v50 = vpop.eup %367 }
 0x1cf   :  { %v370_v51 = vpop.eup %369  ;;  %v225_v52 = vadd.f32 1.0, %v368_v50 }
 0x1d0   :  { %v224_v53 = vadd.f32 1.0, %v370_v51 }
 0x1d1   :  { %371 = vrcp.f32 %v225_v52 }
 0x1d2   :  { %373 = vrcp.f32 %v224_v53 }
 0x1db   :  { %v372_v54 = vpop.eup %371 }
 0x1dc   :  { %v374_v55 = vpop.eup %373  ;;  %233 = vst.msk [vmem:[%s499_s5 + $0x8] sm:$0x3] %vm232_vm2, %v372_v54 }
 0x1dd   :  { %231 = vst.msk [vmem:[%s499_s5] sm:$0xff] %vm230_vm3, %v374_v55 }

</bundles_post_ra>
